<compile_context>
chip_gen: v6e
topology: v6e:2x2x1
jax: 0.10.0
libtpu: 0.0.40
codegen_flags: <defaults>
</compile_context>

<pallas_src>
import numpy as np
import jax
import jax.numpy as jnp
from jax.experimental import pallas as pl
from jax.experimental.pallas import tpu as pltpu


def _round_up(x, m):
    return ((x + m - 1) // m) * m


# ---------------------------------------------------------------------------
# Fused Pallas kernel: whole level-1 base-model forward = one MXU matmul
# ---------------------------------------------------------------------------
def _fused_forecast_kernel(act_ref, w_ref, o_ref):
    """act_ref : VMEM bf16[TILE_B, K_pad]   [feats_in | inputs | feats_tgt | 1 | 0-pad]
       w_ref   : VMEM bf16[K_pad,  N_pad]   [w_f ; w_x ; w_t ; bias ; 0-pad]
       o_ref   : VMEM f32 [TILE_B, N_pad]   lane-dense padded forecast horizon
    """
    o_ref[...] = jnp.dot(act_ref[...], w_ref[...],
                         preferred_element_type=jnp.float32)


# ---------------------------------------------------------------------------
# Synthetic level-1 base model (external `base_models_dict[1]` in PyTorch)
# ---------------------------------------------------------------------------
class LinearForecasterPallas:
    # TODO(synk): the original module calls an externally-trained base model
    # (RNN/seq2seq) from base_models_dict; it is synthesized here as a linear
    # forecaster with deterministic PRNG weights so the forward is self-contained.
    def __init__(self, enc_len, dec_len, f_in, f_tgt, key):
        self.enc_len, self.dec_len = enc_len, dec_len
        self.f_in, self.f_tgt = f_in, f_tgt

        self.k_feats = enc_len * f_in
        self.k_inputs = enc_len
        self.k_tgt = dec_len * f_tgt
        self.k_total = self.k_feats + self.k_inputs + self.k_tgt + 1   # +1 bias col
        self.k_pad = _round_up(self.k_total, 128)                      # one MXU K-tile
        self.n_pad = _round_up(dec_len, 128)                           # lane-dense N

        kf, kx, kt, kb = jax.random.split(key, 4)
        scale = 0.2
        # Plain f32 weights (kept for the independent reference check).
        self.w_f = jax.random.normal(kf, (self.k_feats, dec_len), jnp.float32) * scale
        self.w_x = jax.random.normal(kx, (self.k_inputs, dec_len), jnp.float32) * scale
        self.w_t = jax.random.normal(kt, (self.k_tgt, dec_len), jnp.float32) * scale
        self.bias = jax.random.normal(kb, (dec_len,), jnp.float32) * 0.1

        # Fused, padded, bias-folded weight built ONCE; stored on device as bf16.
        w = jnp.zeros((self.k_pad, self.n_pad), jnp.float32)
        o0 = 0
        w = w.at[o0:o0 + self.k_feats, :dec_len].set(self.w_f)
        o0 += self.k_feats
        w = w.at[o0:o0 + self.k_inputs, :dec_len].set(self.w_x)
        o0 += self.k_inputs
        w = w.at[o0:o0 + self.k_tgt, :dec_len].set(self.w_t)
        o0 += self.k_tgt
        w = w.at[o0, :dec_len].set(self.bias)
        self.w_fused = w.astype(jnp.bfloat16)

    def _pack_activations(self, feats_in, inputs, feats_tgt, b_pad):
        """Concatenate + flatten the three inputs, append the constant-1 bias
        column, zero-pad to (b_pad, k_pad), cast to bf16 for the MXU."""
        B = feats_in.shape[0]
        fin = feats_in.reshape(B, -1).astype(jnp.float32)
        xin = inputs.reshape(B, -1).astype(jnp.float32)
        ftg = feats_tgt.reshape(B, -1).astype(jnp.float32)
        ones = jnp.ones((B, 1), jnp.float32)
        act = jnp.concatenate([fin, xin, ftg, ones], axis=1)          # (B, k_total)
        act = jnp.pad(act, ((0, b_pad - B), (0, self.k_pad - self.k_total)))
        return act.astype(jnp.bfloat16)

    def __call__(self, feats_in, inputs, feats_tgt):
        B = feats_in.shape[0]
        b_min = _round_up(B, 8)                       # full sublanes (unmasked stores)
        tile_b = min(512, b_min)                      # 512-row blocks ~ v6e HBM roofline,
        b_pad = _round_up(b_min, tile_b)              # still tiny vs v7x's 64 MiB VMEM
        act = self._pack_activations(feats_in, inputs, feats_tgt, b_pad)

        out = pl.pallas_call(
            _fused_forecast_kernel,
            out_shape=jax.ShapeDtypeStruct((b_pad, self.n_pad), jnp.float32),
            grid=(b_pad // tile_b,),
            in_specs=[
                pl.BlockSpec((tile_b, self.k_pad), lambda i: (i, 0)),       # activations
                pl.BlockSpec((self.k_pad, self.n_pad), lambda i: (0, 0)),   # resident weight
            ],
            out_specs=pl.BlockSpec((tile_b, self.n_pad), lambda i: (i, 0)),
            compiler_params=pltpu.CompilerParams(
                dimension_semantics=("parallel",)),   # batch tiles split across v7x TCs
        )(act, self.w_fused)

        # Base models in the reference repo return (B, dec_len, 1).
        return out[:B, :self.dec_len][..., None]


# ---------------------------------------------------------------------------
# MSE module (JAX/Pallas) — same forward semantics as the PyTorch module
# ---------------------------------------------------------------------------
class MSE:
    def __init__(self, base_models_dict):
        self.base_models_dict = base_models_dict

    def forward(self, feats_in_dict, inputs_dict, feats_tgt_dict, norm_dict,
                targets_dict=None):
        # Dispatch to the bottom-level (level-1) base model; norm_dict and
        # targets_dict are intentionally unused, matching the PyTorch module.
        # TODO(synk): at (B=2, dec_len=8) the call is launch-overhead bound;
        # stack multiple series/levels into one call to amortize it.
        return self.base_models_dict[1](feats_in_dict[1], inputs_dict[1],
                                        feats_tgt_dict[1])

    __call__ = forward


# ---------------------------------------------------------------------------
# Pure JAX reference (independent of the fused packing; mirrors bf16 rounding)
# ---------------------------------------------------------------------------
def reference_forward(model, feats_in_dict, inputs_dict, feats_tgt_dict,
                      norm_dict):
    bm = model.base_models_dict[1]
    B = feats_in_dict[1].shape[0]
    f32 = jnp.float32
    bf = lambda a: a.astype(jnp.bfloat16).astype(f32)
    fin = bf(feats_in_dict[1].reshape(B, -1))
    xin = bf(inputs_dict[1].reshape(B, -1))
    ftg = bf(feats_tgt_dict[1].reshape(B, -1))
    out = (fin @ bf(bm.w_f) + xin @ bf(bm.w_x) + ftg @ bf(bm.w_t)
           + bf(bm.bias)[None, :])
    return out[..., None]


# ---------------------------------------------------------------------------
if __name__ == "__main__":
    key = jax.random.PRNGKey(0)

    batch = 2
    enc_len = 16      # encoder (history) window length
    dec_len = 8       # decoder (forecast) horizon
    f_in = 4          # per-step encoder feature dim
    f_tgt = 4         # per-step decoder feature dim

    key, kmodel = jax.random.split(key)
    base_models_dict = {
        1: LinearForecasterPallas(enc_len, dec_len, f_in, f_tgt, kmodel),
    }
    model = MSE(base_models_dict)

    key, k1, k2, k3 = jax.random.split(key, 4)
    feats_in_dict = {1: jax.random.normal(k1, (batch, enc_len, f_in), jnp.float32)}
    inputs_dict = {1: jax.random.normal(k2, (batch, enc_len, 1), jnp.float32)}
    feats_tgt_dict = {1: jax.random.normal(k3, (batch, dec_len, f_tgt), jnp.float32)}
    norm_dict = {1: (0.05, 1.25)}   # present but unused, as in the PyTorch MSE

    out = model(feats_in_dict, inputs_dict, feats_tgt_dict, norm_dict)
    out = jax.block_until_ready(out)

    ref = reference_forward(model, feats_in_dict, inputs_dict, feats_tgt_dict,
                            norm_dict)
    assert out.shape == (batch, dec_len, 1)
    assert np.allclose(np.asarray(out), np.asarray(ref), atol=1e-3, rtol=1e-3)

    print("KERNEL_OK")
</pallas_src>

<mosaic_0001>
module attributes {stable_mosaic.version = 11 : i64} {
  func.func @_fused_forecast_kernel(%arg0: i32, %arg1: memref<8x128xbf16, #tpu.memory_space<vmem>>, %arg2: memref<128x128xbf16, #tpu.memory_space<vmem>>, %arg3: memref<8x128xf32, #tpu.memory_space<vmem>>) attributes {dimension_semantics = [#tpu.dimension_semantics<parallel>], iteration_bounds = array<i64: 1>, scalar_prefetch = 0 : i64, scratch_operands = 0 : i64, tpu.core_type = #tpu.core_type<tc>, window_params = [{transform_indices = @transform_0, window_bounds = array<i64: 8, 128>}, {pipeline_mode = #tpu.pipeline_mode<synchronous>, transform_indices = @transform_1, window_bounds = array<i64: 128, 128>}, {transform_indices = @transform_2, window_bounds = array<i64: 8, 128>}]} {
    %c0 = arith.constant 0 : index
    %c0_0 = arith.constant 0 : index
    %0 = vector.load %arg1[%c0, %c0_0] : memref<8x128xbf16, #tpu.memory_space<vmem>>, vector<8x128xbf16>
    %c0_1 = arith.constant 0 : index
    %c0_2 = arith.constant 0 : index
    %1 = vector.load %arg2[%c0_1, %c0_2] : memref<128x128xbf16, #tpu.memory_space<vmem>>, vector<128x128xbf16>
    %cst = arith.constant dense<0.000000e+00> : vector<8x128xf32>
    %2 = tpu.matmul %0, %1, %cst {dimension_numbers = #tpu.dot_dimension_numbers<[1], [0], [0], [1], [0, 0, 1, 1], [], []>} : vector<8x128xbf16>, vector<128x128xbf16>, vector<8x128xf32> -> vector<8x128xf32>
    %c0_3 = arith.constant 0 : index
    %c0_4 = arith.constant 0 : index
    %3 = vector.load %arg3[%c0_3, %c0_4] : memref<8x128xf32, #tpu.memory_space<vmem>>, vector<8x128xf32>
    tpu.vector_store %arg3[%c0_3, %c0_4], %2 {strides = array<i32>} : memref<8x128xf32, #tpu.memory_space<vmem>>, vector<8x128xf32>,
    return
  }
  func.func @transform_0(%arg0: i32) -> (i32, i32) {
    %c0_i32 = arith.constant 0 : i32
    %c0_i32_0 = arith.constant 0 : i32
    return %arg0, %c0_i32 : i32, i32
  }
  func.func @transform_1(%arg0: i32) -> (i32, i32) {
    %c0_i32 = arith.constant 0 : i32
    %c0_i32_0 = arith.constant 0 : i32
    %c0_i32_1 = arith.constant 0 : i32
    return %c0_i32, %c0_i32_0 : i32, i32
  }
  func.func @transform_2(%arg0: i32) -> (i32, i32) {
    %c0_i32 = arith.constant 0 : i32
    %c0_i32_0 = arith.constant 0 : i32
    return %arg0, %c0_i32 : i32, i32
  }
}

</mosaic_0001>

<bundles_post_ra>
// kernel: tpu_custom_call.1
= control target key start
LH: loop header
LB: loop body
LE: loop exit
PB: predicated region body
PF: predicated region fallthrough
CT: control target
= control target key end

     0   :  { %7 = vsyncpa [#allocation3], 0  ;;  %s310_s0 = inlined_call_operand.hbm [shape: bf16[8,128], index: 0, kind: input, shape index: {}]   ;;  %s311_s1 = inlined_call_operand.hbm [shape: bf16[128,128], index: 1, kind: input, shape index: {}]   ;;  %s312_s2 = inlined_call_operand.hbm [shape: f32[8,128], index: 2, kind: output, shape index: {}]  }
   0x1   :  { %8 = vsyncpa [#allocation6], 0 }
   0x2   :  { %9 = vsyncpa [#allocation4], 0  ;;  %s279_s9 = smov [#allocation2]   ;;  %s280_s11 = smov [#allocation5]  }
   0x3   :  { %s16_s10 = sshll.u32 %s279_s9, 4  ;;  %s25_s12 = sshll.u32 %s280_s11, 4  ;;  %s17_s10 = int_to_ptr.vmem [resolvable:$true] %s16_s10  ;;  %s26_s12 = int_to_ptr.vmem [resolvable:$true] %s25_s12 }
   0x4   :  { %s221_s13 = scalar_lea.vmem %s17_s10, 64  ;;  %p226_p1 = scmp.lt.s32.totalorder %s17_s10, %s17_s10 }
   0x5   :  { %p222_p0 = scmp.ne.s32.totalorder %s17_s10, %s221_s13  ;;  %p227_p2 = scmp.lt.s32.totalorder %s221_s13, %s221_s13 }
   0x7   :  { %p228_p3 = por %p227_p2, %p226_p1 }
   0x9   :  { %p229_p4 = pnand %p228_p3, %p222_p0 }
   0xb   :  { %232 = shalt.err (!%p229_p4)
}
   0xc   :  { %19 = dma.hbm_to_vmem [thread:$0]  %s310_s0, 64, %s17_s10, [#allocation3]  }
   0xd   :  { %s241_s16 = scalar_lea.vmem %s26_s12, 1024  ;;  %p246_p6 = scmp.lt.s32.totalorder %s26_s12, %s26_s12 }
   0xe   :  { %p242_p5 = scmp.ne.s32.totalorder %s26_s12, %s241_s16  ;;  %p247_p7 = scmp.lt.s32.totalorder %s241_s16, %s241_s16 }
  0x10   :  { %p248_p8 = por %p247_p7, %p246_p6 }
  0x12   :  { %p249_p9 = pnand %p248_p8, %p242_p5 }
  0x14   :  { %252 = shalt.err (!%p249_p9)
}
  0x15   :  { %s281_s17 = smov 64   ;;  %s282_s18 = smov 4  }
  0x16   :  { %31 = dma.hbm_to_vmem [thread:$0]  %s311_s1, 1024, %s26_s12, [#allocation6], %s281_s17, %s281_s17, %s282_s18  }
  0x17   :  { %273 = dma.done.wait [#allocation3], 64  }
  0x18   :  { %274 = vsyncadd [#allocation3], 4294967232 }
  0x19   :  { %275 = dma.done.wait [#allocation6], 1024  }
  0x1a   :  { %276 = vsyncadd [#allocation6], 4294966272  ;;  %v283_v0 = vmov 0.0   ;;  %vm284_vm0 = vmmov 0   ;;  %v205_v1 = vld [vmem:[#allocation5 + $0x38] sm:$0xff]   ;;  %v206_v2 = vld [vmem:[#allocation5 + $0x30] sm:$0xff]  }
  0x1b   :  { %178 = vmatprep.subr.bf16.mxu0 %v283_v0  ;;  %194 = vmatprep.mubr.msk.bf16.mxu0 %vm284_vm0, %v283_v0  ;;  %v207_v3 = vld [vmem:[#allocation5 + $0x28] sm:$0xff]   ;;  %v208_v4 = vld [vmem:[#allocation5 + $0x20] sm:$0xff]   ;;  %v209_v5 = vld [vmem:[#allocation5 + $0x18] sm:$0xff]   ;;  %s285_s0 = smov [#allocation7]  }
  0x1c   :  { %179 = vmatpush3.bf16.msra.mxu0 %v205_v1  ;;  %v210_v6 = vld [vmem:[#allocation5 + $0x10] sm:$0xff]   ;;  %v211_v7 = vld [vmem:[#allocation5 + $0x8] sm:$0xff]   ;;  %v212_v8 = vld [vmem:[#allocation5] sm:$0xff]   ;;  %s151_s1 = sshll.u32 %s285_s0, 4  ;;  %s152_s1 = int_to_ptr.vmem [resolvable:$true] %s151_s1 }
  0x1d   :  { %180 = vmatprep.subr.bf16.mxu0 %v283_v0  ;;  %v39_v9 = vld [vmem:[#allocation2] sm:$0xf]  ;;  %s253_s21 = scalar_lea.vmem %s152_s1, 128  ;;  %p258_p11 = scmp.lt.s32.totalorder %s152_s1, %s152_s1 }
  0x1e   :  { %p254_p10 = scmp.ne.s32.totalorder %s152_s1, %s253_s21  ;;  %p259_p12 = scmp.lt.s32.totalorder %s253_s21, %s253_s21 }
  0x20   :  { %181 = vmatpush3.bf16.msra.mxu0 %v206_v2  ;;  %p260_p13 = por %p259_p12, %p258_p11 }
  0x21   :  { %182 = vmatprep.subr.bf16.mxu0 %v283_v0 }
  0x22   :  { %p261_p0 = pnand %p260_p13, %p254_p10 }
  0x24   :  { %183 = vmatpush3.bf16.msra.mxu0 %v207_v3 }
  0x25   :  { %184 = vmatprep.subr.bf16.mxu0 %v283_v0 }
  0x28   :  { %185 = vmatpush3.bf16.msra.mxu0 %v208_v4 }
  0x29   :  { %186 = vmatprep.subr.bf16.mxu0 %v283_v0 }
  0x2c   :  { %187 = vmatpush3.bf16.msra.mxu0 %v209_v5 }
  0x2d   :  { %188 = vmatprep.subr.bf16.mxu0 %v283_v0 }
  0x30   :  { %189 = vmatpush3.bf16.msra.mxu0 %v210_v6 }
  0x31   :  { %190 = vmatprep.subr.bf16.mxu0 %v283_v0 }
  0x34   :  { %191 = vmatpush3.bf16.msra.mxu0 %v211_v7 }
  0x35   :  { %192 = vmatprep.subr.bf16.mxu0 %v283_v0 }
  0x38   :  { %193 = vmatpush3.bf16.msra.mxu0 %v212_v8 }
  0x3b   :  { %195 = vmatmul.mubr.bf16.vlgmr.msra.gmra.mxu0 %v39_v9 }
  0xfb   :  { %v138_v10 = vpop.f32.mrf.mxu0 }
  0xfc   :  { %144 = vst [vmem:[#allocation7] sm:$0xff] %v138_v10 }
  0xfd   :  { %v196_v11 = vpop.f32.mrf.mxu0 }
  0xfe   :  { %264 = shalt.err (!%p261_p0)
}
  0xff   :  { %154 = dma.vmem_to_hbm [thread:$0]  %s152_s1, 128, %s312_s2, [#allocation4]   ;;  %v141_v12 = vpop.f32.mrf.mxu0 }
 0x101   :  { %v197_v13 = vpop.f32.mrf.mxu0 }
 0x102   :  { %277 = dma.done.wait [#allocation4], 128  }
 0x103   :  { %278 = vsyncadd [#allocation4], 4294967168 }
 0x104   :  { %158 = vsyncpa [#allocation3], 1 }
 0x105   :  { %159 = vsyncpa [#allocation6], 1 }
 0x106   :  { %160 = vsyncpa [#allocation4], 1 }

</bundles_post_ra>
